<compile_context>
chip_gen: v6e
topology: v6e:2x2x1
jax: 0.10.0
libtpu: 0.0.40
codegen_flags: <defaults>
</compile_context>

<pallas_src>
import jax
import jax.numpy as jnp
from jax.experimental import pallas as pl
from jax.experimental.pallas import tpu as pltpu


def lstm_attn_kernel(emb_ref, w_ih_ref, w_hh_ref, bias_ref,
                     w_att_ref, b_att_ref, w_fc_ref, b_fc_ref,
                     out_ref,
                     xp_scr, seq_scr):
    """Single-layer unidirectional LSTM -> softmax attention over T -> FC."""
    T, B, H = seq_scr.shape

    # ---- hoisted input projection (off the recurrent chain), bias fused ----
    # One (T*B, E) @ (E, 4H) matmul instead of T tiny matmuls inside the loop.
    xp_scr[...] = (jnp.dot(emb_ref[...], w_ih_ref[...],
                           preferred_element_type=jnp.float32)
                   + bias_ref[...])

    h = jnp.zeros((B, H), jnp.float32)   # hidden=None in PyTorch -> zeros
    c = jnp.zeros((B, H), jnp.float32)

    # Unrolled serial recurrence; T is small and static at trace time.
    # TODO(synk): switch to lax.fori_loop carrying (h, c) if T grows large.
    for t in range(T):
        gates = xp_scr[pl.ds(t * B, B), :]                        # (B, 4H)
        if t > 0:   # h0 == 0 -> skip the recurrent matmul on the first step
            gates = gates + jnp.dot(h, w_hh_ref[...],
                                    preferred_element_type=jnp.float32)
        # Two full-width transcendental passes, then cheap lane slices.
        sig = jax.nn.sigmoid(gates)                               # (B, 4H)
        tnh = jnp.tanh(gates)                                     # (B, 4H)
        i_g = sig[:, 0 * H:1 * H]
        f_g = sig[:, 1 * H:2 * H]
        g_g = tnh[:, 2 * H:3 * H]
        o_g = sig[:, 3 * H:4 * H]
        c = i_g * g_g if t == 0 else f_g * c + i_g * g_g          # c0 == 0
        h = o_g * jnp.tanh(c)
        seq_scr[t] = h                                            # out[:, t, :]

    # ---- attention: VPU multiply + lane reduce (no MXU), softmax over T ----
    seq = seq_scr[...]                                            # (T, B, H)
    logits = (jnp.sum(seq * w_att_ref[...], axis=-1, keepdims=True)
              + b_att_ref[...])                                   # (T, B, 1)
    m = jnp.max(logits, axis=0, keepdims=True)
    e = jnp.exp(logits - m)
    denom = jnp.sum(e, axis=0, keepdims=True)                     # (1, B, 1)
    attn = e * pl.reciprocal(denom, approx=True)                  # (T, B, 1)
    context = jnp.sum(attn * seq, axis=0)                         # (B, H)

    # ---- classifier head ---------------------------------------------------
    out_ref[...] = (jnp.dot(context, w_fc_ref[...],
                            preferred_element_type=jnp.float32)
                    + b_fc_ref[...])                              # (B, n_out)


def model_forward(x_tokens, params):
    """JAX wrapper: embedding gather (glue) + one Pallas call for the hot path."""
    emb_table = params["embedding"]
    B, T = x_tokens.shape
    H = params["w_hh"].shape[1]
    n_out = params["w_fc"].shape[0]

    # Time-major embedding gather: transpose the *int* tokens, then gather,
    # so no (T, B, E) float transpose is materialized before the kernel.
    tok_tm = jnp.transpose(x_tokens, (1, 0)).reshape(T * B)              # (T*B,)
    emb_flat = jnp.take(emb_table, tok_tm, axis=0).astype(jnp.float32)   # (T*B, E)

    # Pre-transposed / pre-fused parameters (kernel does row-major x @ W).
    # TODO(synk): optionally cast matmul operands to bf16 on v5e/v6e after
    # validating tolerance; kept f32 here so the kernel matches the f32 reference.
    w_ih_t = params["w_ih"].T.astype(jnp.float32)                        # (E, 4H)
    w_hh_t = params["w_hh"].T.astype(jnp.float32)                        # (H, 4H)
    bias = (params["b_ih"] + params["b_hh"]).reshape(1, -1).astype(jnp.float32)
    w_att = params["w_att"].astype(jnp.float32)                          # (1, H)
    b_att = params["b_att"].reshape(1, 1).astype(jnp.float32)            # (1, 1)
    w_fc_t = params["w_fc"].T.astype(jnp.float32)                        # (H, 10)
    b_fc = params["b_fc"].reshape(1, -1).astype(jnp.float32)             # (1, 10)

    vmem = pl.BlockSpec(memory_space=pltpu.MemorySpace.VMEM)
    # Grid-less single call: all operands/scratch are tens of KB (fits VMEM on
    # every generation); the kernel is latency-bound, not VMEM/BW-bound.
    # TODO(synk): for large batch on v7x, add a leading grid axis over batch
    # tiles with dimension_semantics=("parallel",) so both TensorCores are used.
    out = pl.pallas_call(
        lstm_attn_kernel,
        out_shape=jax.ShapeDtypeStruct((B, n_out), jnp.float32),
        in_specs=[vmem] * 8,
        out_specs=vmem,
        scratch_shapes=[
            pltpu.VMEM((T * B, 4 * H), jnp.float32),   # hoisted input projection
            pltpu.VMEM((T, B, H), jnp.float32),        # LSTM outputs over time
        ],
    )(emb_flat, w_ih_t, w_hh_t, bias, w_att, b_att, w_fc_t, b_fc)
    return out


def reference_forward(x_tokens, params):
    """Pure-JAX reference replicating the PyTorch forward exactly."""
    emb = jnp.take(params["embedding"], x_tokens, axis=0)        # (B, T, E)
    B, T, _ = emb.shape
    H = params["w_hh"].shape[1]
    h = jnp.zeros((B, H), jnp.float32)
    c = jnp.zeros((B, H), jnp.float32)
    outs = []
    for t in range(T):
        gates = (emb[:, t, :] @ params["w_ih"].T + params["b_ih"]
                 + h @ params["w_hh"].T + params["b_hh"])
        i = jax.nn.sigmoid(gates[:, :H])
        f = jax.nn.sigmoid(gates[:, H:2 * H])
        g = jnp.tanh(gates[:, 2 * H:3 * H])
        o = jax.nn.sigmoid(gates[:, 3 * H:])
        c = f * c + i * g
        h = o * jnp.tanh(c)
        outs.append(h)
    out = jnp.stack(outs, axis=1)                                # (B, T, H)
    logits = out @ params["w_att"].T + params["b_att"]           # (B, T, 1)
    attn = jax.nn.softmax(logits, axis=1)
    context = jnp.sum(attn * out, axis=1)                        # (B, H)
    return context @ params["w_fc"].T + params["b_fc"]           # (B, 10)


def init_params(key, vocab_size, embedding_size, hidden_size, n_classes=10):
    ks = jax.random.split(key, 9)
    s = 0.1
    return {
        "embedding": s * jax.random.normal(ks[0], (vocab_size, embedding_size), jnp.float32),
        "w_ih": s * jax.random.normal(ks[1], (4 * hidden_size, embedding_size), jnp.float32),
        "w_hh": s * jax.random.normal(ks[2], (4 * hidden_size, hidden_size), jnp.float32),
        "b_ih": s * jax.random.normal(ks[3], (4 * hidden_size,), jnp.float32),
        "b_hh": s * jax.random.normal(ks[4], (4 * hidden_size,), jnp.float32),
        "w_att": s * jax.random.normal(ks[5], (1, hidden_size), jnp.float32),
        "b_att": s * jax.random.normal(ks[6], (1,), jnp.float32),
        "w_fc": s * jax.random.normal(ks[7], (n_classes, hidden_size), jnp.float32),
        "b_fc": s * jax.random.normal(ks[8], (n_classes,), jnp.float32),
    }


if __name__ == "__main__":
    VOCAB, EMB, HID = 32, 16, 32
    B, T = 2, 8

    key = jax.random.PRNGKey(0)
    k_param, k_tok = jax.random.split(key)
    params = init_params(k_param, VOCAB, EMB, HID)
    x_tokens = jax.random.randint(k_tok, (B, T), 0, VOCAB, dtype=jnp.int32)

    out = model_forward(x_tokens, params)
    out = jax.block_until_ready(out)

    ref = reference_forward(x_tokens, params)
    assert out.shape == (B, 10)
    # Tolerance slightly loosened vs. f32-exact to accommodate the EUP
    # approximate reciprocal used for the softmax normalization.
    assert jnp.allclose(out, ref, atol=2e-4, rtol=2e-4), (out, ref)

    print("KERNEL_OK")
</pallas_src>

<mosaic_0001>
module attributes {stable_mosaic.version = 11 : i64} {
  func.func @lstm_attn_kernel(%arg0: memref<16x16xf32, #tpu.memory_space<vmem>>, %arg1: memref<16x128xf32, #tpu.memory_space<vmem>>, %arg2: memref<32x128xf32, #tpu.memory_space<vmem>>, %arg3: memref<1x128xf32, #tpu.memory_space<vmem>>, %arg4: memref<1x32xf32, #tpu.memory_space<vmem>>, %arg5: memref<1x1xf32, #tpu.memory_space<vmem>>, %arg6: memref<32x10xf32, #tpu.memory_space<vmem>>, %arg7: memref<1x10xf32, #tpu.memory_space<vmem>>, %arg8: memref<2x10xf32, #tpu.memory_space<vmem>>, %arg9: memref<16x128xf32, #tpu.memory_space<vmem>>, %arg10: memref<8x2x32xf32, #tpu.memory_space<vmem>>) attributes {dimension_semantics = [], scalar_prefetch = 0 : i64, scratch_operands = 2 : i64, tpu.core_type = #tpu.core_type<tc>} {
    %c0 = arith.constant 0 : index
    %c0_0 = arith.constant 0 : index
    %0 = vector.load %arg0[%c0, %c0_0] : memref<16x16xf32, #tpu.memory_space<vmem>>, vector<16x16xf32>
    %c0_1 = arith.constant 0 : index
    %c0_2 = arith.constant 0 : index
    %1 = vector.load %arg1[%c0_1, %c0_2] : memref<16x128xf32, #tpu.memory_space<vmem>>, vector<16x128xf32>
    %cst = arith.constant dense<0.000000e+00> : vector<16x128xf32>
    %2 = tpu.matmul %0, %1, %cst {dimension_numbers = #tpu.dot_dimension_numbers<[1], [0], [0], [1], [0, 0, 1, 1], [], []>} : vector<16x16xf32>, vector<16x128xf32>, vector<16x128xf32> -> vector<16x128xf32>
    %c0_3 = arith.constant 0 : index
    %c0_4 = arith.constant 0 : index
    %3 = vector.load %arg3[%c0_3, %c0_4] : memref<1x128xf32, #tpu.memory_space<vmem>>, vector<1x128xf32>
    %4 = vector.broadcast %3 : vector<1x128xf32> to vector<16x128xf32>
    %5 = arith.addf %2, %4 : vector<16x128xf32>
    %c0_5 = arith.constant 0 : index
    %c0_6 = arith.constant 0 : index
    %6 = vector.load %arg9[%c0_5, %c0_6] : memref<16x128xf32, #tpu.memory_space<vmem>>, vector<16x128xf32>
    tpu.vector_store %arg9[%c0_5, %c0_6], %5 {strides = array<i32>} : memref<16x128xf32, #tpu.memory_space<vmem>>, vector<16x128xf32>,
    %c0_7 = arith.constant 0 : index
    %c0_8 = arith.constant 0 : index
    %7 = vector.load %arg9[%c0_7, %c0_8] : memref<16x128xf32, #tpu.memory_space<vmem>>, vector<2x128xf32>
    %8 = arith.negf %7 : vector<2x128xf32>
    %9 = math.exp %8 : vector<2x128xf32>
    %cst_9 = arith.constant 1.000000e+00 : f32
    %10 = vector.broadcast %cst_9 : f32 to vector<2x128xf32>
    %11 = arith.addf %10, %9 : vector<2x128xf32>
    %12 = arith.divf %10, %11 : vector<2x128xf32>
    %13 = math.tanh %7 : vector<2x128xf32>
    %14 = vector.extract_strided_slice %12 {offsets = [0, 0], sizes = [2, 32], strides = [1, 1]} : vector<2x128xf32> to vector<2x32xf32>
    %15 = vector.extract_strided_slice %13 {offsets = [0, 64], sizes = [2, 32], strides = [1, 1]} : vector<2x128xf32> to vector<2x32xf32>
    %16 = vector.extract_strided_slice %12 {offsets = [0, 96], sizes = [2, 32], strides = [1, 1]} : vector<2x128xf32> to vector<2x32xf32>
    %17 = arith.mulf %14, %15 : vector<2x32xf32>
    %18 = math.tanh %17 : vector<2x32xf32>
    %19 = arith.mulf %16, %18 : vector<2x32xf32>
    %c0_10 = arith.constant 0 : index
    %c0_11 = arith.constant 0 : index
    %c0_12 = arith.constant 0 : index
    %20 = vector.load %arg10[%c0_10, %c0_11, %c0_12] : memref<8x2x32xf32, #tpu.memory_space<vmem>>, vector<1x2x32xf32>
    %21 = vector.shape_cast %20 : vector<1x2x32xf32> to vector<2x32xf32>
    %22 = vector.shape_cast %19 : vector<2x32xf32> to vector<1x2x32xf32>
    tpu.vector_store %arg10[%c0_10, %c0_11, %c0_12], %22 {strides = array<i32>} : memref<8x2x32xf32, #tpu.memory_space<vmem>>, vector<1x2x32xf32>,
    %c2 = arith.constant 2 : index
    %c0_13 = arith.constant 0 : index
    %23 = vector.load %arg9[%c2, %c0_13] : memref<16x128xf32, #tpu.memory_space<vmem>>, vector<2x128xf32>
    %c0_14 = arith.constant 0 : index
    %c0_15 = arith.constant 0 : index
    %24 = vector.load %arg2[%c0_14, %c0_15] : memref<32x128xf32, #tpu.memory_space<vmem>>, vector<32x128xf32>
    %cst_16 = arith.constant dense<0.000000e+00> : vector<2x128xf32>
    %25 = tpu.matmul %19, %24, %cst_16 {dimension_numbers = #tpu.dot_dimension_numbers<[1], [0], [0], [1], [0, 0, 1, 1], [], []>} : vector<2x32xf32>, vector<32x128xf32>, vector<2x128xf32> -> vector<2x128xf32>
    %26 = arith.addf %23, %25 : vector<2x128xf32>
    %27 = arith.negf %26 : vector<2x128xf32>
    %28 = math.exp %27 : vector<2x128xf32>
    %cst_17 = arith.constant 1.000000e+00 : f32
    %29 = vector.broadcast %cst_17 : f32 to vector<2x128xf32>
    %30 = arith.addf %29, %28 : vector<2x128xf32>
    %31 = arith.divf %29, %30 : vector<2x128xf32>
    %32 = math.tanh %26 : vector<2x128xf32>
    %33 = vector.extract_strided_slice %31 {offsets = [0, 0], sizes = [2, 32], strides = [1, 1]} : vector<2x128xf32> to vector<2x32xf32>
    %34 = vector.extract_strided_slice %31 {offsets = [0, 32], sizes = [2, 32], strides = [1, 1]} : vector<2x128xf32> to vector<2x32xf32>
    %35 = vector.extract_strided_slice %32 {offsets = [0, 64], sizes = [2, 32], strides = [1, 1]} : vector<2x128xf32> to vector<2x32xf32>
    %36 = vector.extract_strided_slice %31 {offsets = [0, 96], sizes = [2, 32], strides = [1, 1]} : vector<2x128xf32> to vector<2x32xf32>
    %37 = arith.mulf %34, %17 : vector<2x32xf32>
    %38 = arith.mulf %33, %35 : vector<2x32xf32>
    %39 = arith.addf %37, %38 : vector<2x32xf32>
    %40 = math.tanh %39 : vector<2x32xf32>
    %41 = arith.mulf %36, %40 : vector<2x32xf32>
    %c1 = arith.constant 1 : index
    %c0_18 = arith.constant 0 : index
    %c0_19 = arith.constant 0 : index
    %42 = vector.load %arg10[%c1, %c0_18, %c0_19] : memref<8x2x32xf32, #tpu.memory_space<vmem>>, vector<1x2x32xf32>
    %43 = vector.shape_cast %42 : vector<1x2x32xf32> to vector<2x32xf32>
    %44 = vector.shape_cast %41 : vector<2x32xf32> to vector<1x2x32xf32>
    tpu.vector_store %arg10[%c1, %c0_18, %c0_19], %44 {strides = array<i32>} : memref<8x2x32xf32, #tpu.memory_space<vmem>>, vector<1x2x32xf32>,
    %c4 = arith.constant 4 : index
    %c0_20 = arith.constant 0 : index
    %45 = vector.load %arg9[%c4, %c0_20] : memref<16x128xf32, #tpu.memory_space<vmem>>, vector<2x128xf32>
    %c0_21 = arith.constant 0 : index
    %c0_22 = arith.constant 0 : index
    %46 = vector.load %arg2[%c0_21, %c0_22] : memref<32x128xf32, #tpu.memory_space<vmem>>, vector<32x128xf32>
    %cst_23 = arith.constant dense<0.000000e+00> : vector<2x128xf32>
    %47 = tpu.matmul %41, %46, %cst_23 {dimension_numbers = #tpu.dot_dimension_numbers<[1], [0], [0], [1], [0, 0, 1, 1], [], []>} : vector<2x32xf32>, vector<32x128xf32>, vector<2x128xf32> -> vector<2x128xf32>
    %48 = arith.addf %45, %47 : vector<2x128xf32>
    %49 = arith.negf %48 : vector<2x128xf32>
    %50 = math.exp %49 : vector<2x128xf32>
    %cst_24 = arith.constant 1.000000e+00 : f32
    %51 = vector.broadcast %cst_24 : f32 to vector<2x128xf32>
    %52 = arith.addf %51, %50 : vector<2x128xf32>
    %53 = arith.divf %51, %52 : vector<2x128xf32>
    %54 = math.tanh %48 : vector<2x128xf32>
    %55 = vector.extract_strided_slice %53 {offsets = [0, 0], sizes = [2, 32], strides = [1, 1]} : vector<2x128xf32> to vector<2x32xf32>
    %56 = vector.extract_strided_slice %53 {offsets = [0, 32], sizes = [2, 32], strides = [1, 1]} : vector<2x128xf32> to vector<2x32xf32>
    %57 = vector.extract_strided_slice %54 {offsets = [0, 64], sizes = [2, 32], strides = [1, 1]} : vector<2x128xf32> to vector<2x32xf32>
    %58 = vector.extract_strided_slice %53 {offsets = [0, 96], sizes = [2, 32], strides = [1, 1]} : vector<2x128xf32> to vector<2x32xf32>
    %59 = arith.mulf %56, %39 : vector<2x32xf32>
    %60 = arith.mulf %55, %57 : vector<2x32xf32>
    %61 = arith.addf %59, %60 : vector<2x32xf32>
    %62 = math.tanh %61 : vector<2x32xf32>
    %63 = arith.mulf %58, %62 : vector<2x32xf32>
    %c2_25 = arith.constant 2 : index
    %c0_26 = arith.constant 0 : index
    %c0_27 = arith.constant 0 : index
    %64 = vector.load %arg10[%c2_25, %c0_26, %c0_27] : memref<8x2x32xf32, #tpu.memory_space<vmem>>, vector<1x2x32xf32>
    %65 = vector.shape_cast %64 : vector<1x2x32xf32> to vector<2x32xf32>
    %66 = vector.shape_cast %63 : vector<2x32xf32> to vector<1x2x32xf32>
    tpu.vector_store %arg10[%c2_25, %c0_26, %c0_27], %66 {strides = array<i32>} : memref<8x2x32xf32, #tpu.memory_space<vmem>>, vector<1x2x32xf32>,
    %c6 = arith.constant 6 : index
    %c0_28 = arith.constant 0 : index
    %67 = vector.load %arg9[%c6, %c0_28] : memref<16x128xf32, #tpu.memory_space<vmem>>, vector<2x128xf32>
    %c0_29 = arith.constant 0 : index
    %c0_30 = arith.constant 0 : index
    %68 = vector.load %arg2[%c0_29, %c0_30] : memref<32x128xf32, #tpu.memory_space<vmem>>, vector<32x128xf32>
    %cst_31 = arith.constant dense<0.000000e+00> : vector<2x128xf32>
    %69 = tpu.matmul %63, %68, %cst_31 {dimension_numbers = #tpu.dot_dimension_numbers<[1], [0], [0], [1], [0, 0, 1, 1], [], []>} : vector<2x32xf32>, vector<32x128xf32>, vector<2x128xf32> -> vector<2x128xf32>
    %70 = arith.addf %67, %69 : vector<2x128xf32>
    %71 = arith.negf %70 : vector<2x128xf32>
    %72 = math.exp %71 : vector<2x128xf32>
    %cst_32 = arith.constant 1.000000e+00 : f32
    %73 = vector.broadcast %cst_32 : f32 to vector<2x128xf32>
    %74 = arith.addf %73, %72 : vector<2x128xf32>
    %75 = arith.divf %73, %74 : vector<2x128xf32>
    %76 = math.tanh %70 : vector<2x128xf32>
    %77 = vector.extract_strided_slice %75 {offsets = [0, 0], sizes = [2, 32], strides = [1, 1]} : vector<2x128xf32> to vector<2x32xf32>
    %78 = vector.extract_strided_slice %75 {offsets = [0, 32], sizes = [2, 32], strides = [1, 1]} : vector<2x128xf32> to vector<2x32xf32>
    %79 = vector.extract_strided_slice %76 {offsets = [0, 64], sizes = [2, 32], strides = [1, 1]} : vector<2x128xf32> to vector<2x32xf32>
    %80 = vector.extract_strided_slice %75 {offsets = [0, 96], sizes = [2, 32], strides = [1, 1]} : vector<2x128xf32> to vector<2x32xf32>
    %81 = arith.mulf %78, %61 : vector<2x32xf32>
    %82 = arith.mulf %77, %79 : vector<2x32xf32>
    %83 = arith.addf %81, %82 : vector<2x32xf32>
    %84 = math.tanh %83 : vector<2x32xf32>
    %85 = arith.mulf %80, %84 : vector<2x32xf32>
    %c3 = arith.constant 3 : index
    %c0_33 = arith.constant 0 : index
    %c0_34 = arith.constant 0 : index
    %86 = vector.load %arg10[%c3, %c0_33, %c0_34] : memref<8x2x32xf32, #tpu.memory_space<vmem>>, vector<1x2x32xf32>
    %87 = vector.shape_cast %86 : vector<1x2x32xf32> to vector<2x32xf32>
    %88 = vector.shape_cast %85 : vector<2x32xf32> to vector<1x2x32xf32>
    tpu.vector_store %arg10[%c3, %c0_33, %c0_34], %88 {strides = array<i32>} : memref<8x2x32xf32, #tpu.memory_space<vmem>>, vector<1x2x32xf32>,
    %c8 = arith.constant 8 : index
    %c0_35 = arith.constant 0 : index
    %89 = vector.load %arg9[%c8, %c0_35] : memref<16x128xf32, #tpu.memory_space<vmem>>, vector<2x128xf32>
    %c0_36 = arith.constant 0 : index
    %c0_37 = arith.constant 0 : index
    %90 = vector.load %arg2[%c0_36, %c0_37] : memref<32x128xf32, #tpu.memory_space<vmem>>, vector<32x128xf32>
    %cst_38 = arith.constant dense<0.000000e+00> : vector<2x128xf32>
    %91 = tpu.matmul %85, %90, %cst_38 {dimension_numbers = #tpu.dot_dimension_numbers<[1], [0], [0], [1], [0, 0, 1, 1], [], []>} : vector<2x32xf32>, vector<32x128xf32>, vector<2x128xf32> -> vector<2x128xf32>
    %92 = arith.addf %89, %91 : vector<2x128xf32>
    %93 = arith.negf %92 : vector<2x128xf32>
    %94 = math.exp %93 : vector<2x128xf32>
    %cst_39 = arith.constant 1.000000e+00 : f32
    %95 = vector.broadcast %cst_39 : f32 to vector<2x128xf32>
    %96 = arith.addf %95, %94 : vector<2x128xf32>
    %97 = arith.divf %95, %96 : vector<2x128xf32>
    %98 = math.tanh %92 : vector<2x128xf32>
    %99 = vector.extract_strided_slice %97 {offsets = [0, 0], sizes = [2, 32], strides = [1, 1]} : vector<2x128xf32> to vector<2x32xf32>
    %100 = vector.extract_strided_slice %97 {offsets = [0, 32], sizes = [2, 32], strides = [1, 1]} : vector<2x128xf32> to vector<2x32xf32>
    %101 = vector.extract_strided_slice %98 {offsets = [0, 64], sizes = [2, 32], strides = [1, 1]} : vector<2x128xf32> to vector<2x32xf32>
    %102 = vector.extract_strided_slice %97 {offsets = [0, 96], sizes = [2, 32], strides = [1, 1]} : vector<2x128xf32> to vector<2x32xf32>
    %103 = arith.mulf %100, %83 : vector<2x32xf32>
    %104 = arith.mulf %99, %101 : vector<2x32xf32>
    %105 = arith.addf %103, %104 : vector<2x32xf32>
    %106 = math.tanh %105 : vector<2x32xf32>
    %107 = arith.mulf %102, %106 : vector<2x32xf32>
    %c4_40 = arith.constant 4 : index
    %c0_41 = arith.constant 0 : index
    %c0_42 = arith.constant 0 : index
    %108 = vector.load %arg10[%c4_40, %c0_41, %c0_42] : memref<8x2x32xf32, #tpu.memory_space<vmem>>, vector<1x2x32xf32>
    %109 = vector.shape_cast %108 : vector<1x2x32xf32> to vector<2x32xf32>
    %110 = vector.shape_cast %107 : vector<2x32xf32> to vector<1x2x32xf32>
    tpu.vector_store %arg10[%c4_40, %c0_41, %c0_42], %110 {strides = array<i32>} : memref<8x2x32xf32, #tpu.memory_space<vmem>>, vector<1x2x32xf32>,
    %c10 = arith.constant 10 : index
    %c0_43 = arith.constant 0 : index
    %111 = vector.load %arg9[%c10, %c0_43] : memref<16x128xf32, #tpu.memory_space<vmem>>, vector<2x128xf32>
    %c0_44 = arith.constant 0 : index
    %c0_45 = arith.constant 0 : index
    %112 = vector.load %arg2[%c0_44, %c0_45] : memref<32x128xf32, #tpu.memory_space<vmem>>, vector<32x128xf32>
    %cst_46 = arith.constant dense<0.000000e+00> : vector<2x128xf32>
    %113 = tpu.matmul %107, %112, %cst_46 {dimension_numbers = #tpu.dot_dimension_numbers<[1], [0], [0], [1], [0, 0, 1, 1], [], []>} : vector<2x32xf32>, vector<32x128xf32>, vector<2x128xf32> -> vector<2x128xf32>
    %114 = arith.addf %111, %113 : vector<2x128xf32>
    %115 = arith.negf %114 : vector<2x128xf32>
    %116 = math.exp %115 : vector<2x128xf32>
    %cst_47 = arith.constant 1.000000e+00 : f32
    %117 = vector.broadcast %cst_47 : f32 to vector<2x128xf32>
    %118 = arith.addf %117, %116 : vector<2x128xf32>
    %119 = arith.divf %117, %118 : vector<2x128xf32>
    %120 = math.tanh %114 : vector<2x128xf32>
    %121 = vector.extract_strided_slice %119 {offsets = [0, 0], sizes = [2, 32], strides = [1, 1]} : vector<2x128xf32> to vector<2x32xf32>
    %122 = vector.extract_strided_slice %119 {offsets = [0, 32], sizes = [2, 32], strides = [1, 1]} : vector<2x128xf32> to vector<2x32xf32>
    %123 = vector.extract_strided_slice %120 {offsets = [0, 64], sizes = [2, 32], strides = [1, 1]} : vector<2x128xf32> to vector<2x32xf32>
    %124 = vector.extract_strided_slice %119 {offsets = [0, 96], sizes = [2, 32], strides = [1, 1]} : vector<2x128xf32> to vector<2x32xf32>
    %125 = arith.mulf %122, %105 : vector<2x32xf32>
    %126 = arith.mulf %121, %123 : vector<2x32xf32>
    %127 = arith.addf %125, %126 : vector<2x32xf32>
    %128 = math.tanh %127 : vector<2x32xf32>
    %129 = arith.mulf %124, %128 : vector<2x32xf32>
    %c5 = arith.constant 5 : index
    %c0_48 = arith.constant 0 : index
    %c0_49 = arith.constant 0 : index
    %130 = vector.load %arg10[%c5, %c0_48, %c0_49] : memref<8x2x32xf32, #tpu.memory_space<vmem>>, vector<1x2x32xf32>
    %131 = vector.shape_cast %130 : vector<1x2x32xf32> to vector<2x32xf32>
    %132 = vector.shape_cast %129 : vector<2x32xf32> to vector<1x2x32xf32>
    tpu.vector_store %arg10[%c5, %c0_48, %c0_49], %132 {strides = array<i32>} : memref<8x2x32xf32, #tpu.memory_space<vmem>>, vector<1x2x32xf32>,
    %c12 = arith.constant 12 : index
    %c0_50 = arith.constant 0 : index
    %133 = vector.load %arg9[%c12, %c0_50] : memref<16x128xf32, #tpu.memory_space<vmem>>, vector<2x128xf32>
    %c0_51 = arith.constant 0 : index
    %c0_52 = arith.constant 0 : index
    %134 = vector.load %arg2[%c0_51, %c0_52] : memref<32x128xf32, #tpu.memory_space<vmem>>, vector<32x128xf32>
    %cst_53 = arith.constant dense<0.000000e+00> : vector<2x128xf32>
    %135 = tpu.matmul %129, %134, %cst_53 {dimension_numbers = #tpu.dot_dimension_numbers<[1], [0], [0], [1], [0, 0, 1, 1], [], []>} : vector<2x32xf32>, vector<32x128xf32>, vector<2x128xf32> -> vector<2x128xf32>
    %136 = arith.addf %133, %135 : vector<2x128xf32>
    %137 = arith.negf %136 : vector<2x128xf32>
    %138 = math.exp %137 : vector<2x128xf32>
    %cst_54 = arith.constant 1.000000e+00 : f32
    %139 = vector.broadcast %cst_54 : f32 to vector<2x128xf32>
    %140 = arith.addf %139, %138 : vector<2x128xf32>
    %141 = arith.divf %139, %140 : vector<2x128xf32>
    %142 = math.tanh %136 : vector<2x128xf32>
    %143 = vector.extract_strided_slice %141 {offsets = [0, 0], sizes = [2, 32], strides = [1, 1]} : vector<2x128xf32> to vector<2x32xf32>
    %144 = vector.extract_strided_slice %141 {offsets = [0, 32], sizes = [2, 32], strides = [1, 1]} : vector<2x128xf32> to vector<2x32xf32>
    %145 = vector.extract_strided_slice %142 {offsets = [0, 64], sizes = [2, 32], strides = [1, 1]} : vector<2x128xf32> to vector<2x32xf32>
    %146 = vector.extract_strided_slice %141 {offsets = [0, 96], sizes = [2, 32], strides = [1, 1]} : vector<2x128xf32> to vector<2x32xf32>
    %147 = arith.mulf %144, %127 : vector<2x32xf32>
    %148 = arith.mulf %143, %145 : vector<2x32xf32>
    %149 = arith.addf %147, %148 : vector<2x32xf32>
    %150 = math.tanh %149 : vector<2x32xf32>
    %151 = arith.mulf %146, %150 : vector<2x32xf32>
    %c6_55 = arith.constant 6 : index
    %c0_56 = arith.constant 0 : index
    %c0_57 = arith.constant 0 : index
    %152 = vector.load %arg10[%c6_55, %c0_56, %c0_57] : memref<8x2x32xf32, #tpu.memory_space<vmem>>, vector<1x2x32xf32>
    %153 = vector.shape_cast %152 : vector<1x2x32xf32> to vector<2x32xf32>
    %154 = vector.shape_cast %151 : vector<2x32xf32> to vector<1x2x32xf32>
    tpu.vector_store %arg10[%c6_55, %c0_56, %c0_57], %154 {strides = array<i32>} : memref<8x2x32xf32, #tpu.memory_space<vmem>>, vector<1x2x32xf32>,
    %c14 = arith.constant 14 : index
    %c0_58 = arith.constant 0 : index
    %155 = vector.load %arg9[%c14, %c0_58] : memref<16x128xf32, #tpu.memory_space<vmem>>, vector<2x128xf32>
    %c0_59 = arith.constant 0 : index
    %c0_60 = arith.constant 0 : index
    %156 = vector.load %arg2[%c0_59, %c0_60] : memref<32x128xf32, #tpu.memory_space<vmem>>, vector<32x128xf32>
    %cst_61 = arith.constant dense<0.000000e+00> : vector<2x128xf32>
    %157 = tpu.matmul %151, %156, %cst_61 {dimension_numbers = #tpu.dot_dimension_numbers<[1], [0], [0], [1], [0, 0, 1, 1], [], []>} : vector<2x32xf32>, vector<32x128xf32>, vector<2x128xf32> -> vector<2x128xf32>
    %158 = arith.addf %155, %157 : vector<2x128xf32>
    %159 = arith.negf %158 : vector<2x128xf32>
    %160 = math.exp %159 : vector<2x128xf32>
    %cst_62 = arith.constant 1.000000e+00 : f32
    %161 = vector.broadcast %cst_62 : f32 to vector<2x128xf32>
    %162 = arith.addf %161, %160 : vector<2x128xf32>
    %163 = arith.divf %161, %162 : vector<2x128xf32>
    %164 = math.tanh %158 : vector<2x128xf32>
    %165 = vector.extract_strided_slice %163 {offsets = [0, 0], sizes = [2, 32], strides = [1, 1]} : vector<2x128xf32> to vector<2x32xf32>
    %166 = vector.extract_strided_slice %163 {offsets = [0, 32], sizes = [2, 32], strides = [1, 1]} : vector<2x128xf32> to vector<2x32xf32>
    %167 = vector.extract_strided_slice %164 {offsets = [0, 64], sizes = [2, 32], strides = [1, 1]} : vector<2x128xf32> to vector<2x32xf32>
    %168 = vector.extract_strided_slice %163 {offsets = [0, 96], sizes = [2, 32], strides = [1, 1]} : vector<2x128xf32> to vector<2x32xf32>
    %169 = arith.mulf %166, %149 : vector<2x32xf32>
    %170 = arith.mulf %165, %167 : vector<2x32xf32>
    %171 = arith.addf %169, %170 : vector<2x32xf32>
    %172 = math.tanh %171 : vector<2x32xf32>
    %173 = arith.mulf %168, %172 : vector<2x32xf32>
    %c7 = arith.constant 7 : index
    %c0_63 = arith.constant 0 : index
    %c0_64 = arith.constant 0 : index
    %174 = vector.load %arg10[%c7, %c0_63, %c0_64] : memref<8x2x32xf32, #tpu.memory_space<vmem>>, vector<1x2x32xf32>
    %175 = vector.shape_cast %174 : vector<1x2x32xf32> to vector<2x32xf32>
    %176 = vector.shape_cast %173 : vector<2x32xf32> to vector<1x2x32xf32>
    tpu.vector_store %arg10[%c7, %c0_63, %c0_64], %176 {strides = array<i32>} : memref<8x2x32xf32, #tpu.memory_space<vmem>>, vector<1x2x32xf32>,
    %c0_65 = arith.constant 0 : index
    %c0_66 = arith.constant 0 : index
    %c0_67 = arith.constant 0 : index
    %177 = vector.load %arg10[%c0_65, %c0_66, %c0_67] : memref<8x2x32xf32, #tpu.memory_space<vmem>>, vector<8x2x32xf32>
    %c0_68 = arith.constant 0 : index
    %c0_69 = arith.constant 0 : index
    %178 = vector.load %arg4[%c0_68, %c0_69] : memref<1x32xf32, #tpu.memory_space<vmem>>, vector<1x32xf32>
    %179 = vector.shape_cast %178 : vector<1x32xf32> to vector<1x1x32xf32>
    %180 = vector.broadcast %179 : vector<1x1x32xf32> to vector<8x2x32xf32>
    %181 = arith.mulf %177, %180 : vector<8x2x32xf32>
    %cst_70 = arith.constant dense<0.000000e+00> : vector<8x2xf32>
    %182 = vector.multi_reduction <add>, %181, %cst_70 [2] : vector<8x2x32xf32> to vector<8x2xf32>
    %183 = vector.shape_cast %182 : vector<8x2xf32> to vector<8x2x1xf32>
    %c0_71 = arith.constant 0 : index
    %c0_72 = arith.constant 0 : index
    %184 = vector.load %arg5[%c0_71, %c0_72] : memref<1x1xf32, #tpu.memory_space<vmem>>, vector<1x1xf32>
    %185 = vector.shape_cast %184 : vector<1x1xf32> to vector<1x1x1xf32>
    %186 = vector.broadcast %185 : vector<1x1x1xf32> to vector<8x2x1xf32>
    %187 = arith.addf %183, %186 : vector<8x2x1xf32>
    %cst_73 = arith.constant dense<0xFF800000> : vector<2x1xf32>
    %188 = vector.multi_reduction <maximumf>, %187, %cst_73 [0] : vector<8x2x1xf32> to vector<2x1xf32>
    %189 = vector.shape_cast %188 : vector<2x1xf32> to vector<1x2x1xf32>
    %190 = vector.broadcast %189 : vector<1x2x1xf32> to vector<8x2x1xf32>
    %191 = arith.subf %187, %190 : vector<8x2x1xf32>
    %192 = math.exp %191 : vector<8x2x1xf32>
    %cst_74 = arith.constant dense<0.000000e+00> : vector<2x1xf32>
    %193 = vector.multi_reduction <add>, %192, %cst_74 [0] : vector<8x2x1xf32> to vector<2x1xf32>
    %194 = vector.shape_cast %193 : vector<2x1xf32> to vector<1x2x1xf32>
    %195 = tpu.reciprocal %194 {approx = true} : vector<1x2x1xf32> -> vector<1x2x1xf32>
    %196 = vector.broadcast %195 : vector<1x2x1xf32> to vector<8x2x1xf32>
    %197 = arith.mulf %192, %196 : vector<8x2x1xf32>
    %198 = vector.broadcast %197 : vector<8x2x1xf32> to vector<8x2x32xf32>
    %199 = arith.mulf %198, %177 : vector<8x2x32xf32>
    %cst_75 = arith.constant dense<0.000000e+00> : vector<2x32xf32>
    %200 = vector.multi_reduction <add>, %199, %cst_75 [0] : vector<8x2x32xf32> to vector<2x32xf32>
    %c0_76 = arith.constant 0 : index
    %c0_77 = arith.constant 0 : index
    %201 = vector.load %arg6[%c0_76, %c0_77] : memref<32x10xf32, #tpu.memory_space<vmem>>, vector<32x10xf32>
    %cst_78 = arith.constant dense<0.000000e+00> : vector<2x10xf32>
    %202 = tpu.matmul %200, %201, %cst_78 {dimension_numbers = #tpu.dot_dimension_numbers<[1], [0], [0], [1], [0, 0, 1, 1], [], []>} : vector<2x32xf32>, vector<32x10xf32>, vector<2x10xf32> -> vector<2x10xf32>
    %c0_79 = arith.constant 0 : index
    %c0_80 = arith.constant 0 : index
    %203 = vector.load %arg7[%c0_79, %c0_80] : memref<1x10xf32, #tpu.memory_space<vmem>>, vector<1x10xf32>
    %204 = vector.broadcast %203 : vector<1x10xf32> to vector<2x10xf32>
    %205 = arith.addf %202, %204 : vector<2x10xf32>
    %c0_81 = arith.constant 0 : index
    %c0_82 = arith.constant 0 : index
    %206 = vector.load %arg8[%c0_81, %c0_82] : memref<2x10xf32, #tpu.memory_space<vmem>>, vector<2x10xf32>
    tpu.vector_store %arg8[%c0_81, %c0_82], %205 {strides = array<i32>} : memref<2x10xf32, #tpu.memory_space<vmem>>, vector<2x10xf32>,
    return
  }
}

</mosaic_0001>

<bundles_post_ra>
// kernel: tpu_custom_call.1
= control target key start
LH: loop header
LB: loop body
LE: loop exit
PB: predicated region body
PF: predicated region fallthrough
CT: control target
= control target key end

     0   :  { %s1814_s0 = inlined_call_operand.vmem [shape: f32[16,16], index: 0, kind: input, shape index: {}]   ;;  %s1815_s1 = inlined_call_operand.hbm [shape: f32[16,128], index: 1, kind: input, shape index: {}]   ;;  %s1816_s2 = inlined_call_operand.vmem [shape: f32[32,128], index: 2, kind: input, shape index: {}]   ;;  %s1817_s3 = inlined_call_operand.vmem [shape: f32[1,128], index: 3, kind: input, shape index: {}]   ;;  %s1818_s4 = inlined_call_operand.vmem [shape: f32[1,32], index: 4, kind: input, shape index: {}]   ;;  %s1819_s5 = inlined_call_operand.<no memory space> [shape: f32[1,1], index: 5, kind: input, shape index: {}]   ;;  %s1820_s6 = inlined_call_operand.vmem [shape: f32[32,10], index: 6, kind: input, shape index: {}]   ;;  %s1821_s7 = inlined_call_operand.vmem [shape: f32[1,10], index: 7, kind: input, shape index: {}]   ;;  %s1822_s8 = inlined_call_operand.hbm [shape: f32[2,10], index: 8, kind: output, shape index: {}]  }
   0x1   :  { %v13_v0 = vstv %s1819_s5 }
   0x2   :  { %14 = vst [vmem:[#allocation4] sm:$0x1] %v13_v0 }
   0x3   :  { %15 = vsyncpa [#allocation6], 0 }
   0x4   :  { %16 = vsyncpa [#allocation7], 0  ;;  %s1516_s29 = smov [#allocation5]  }
   0x5   :  { %s24_s30 = sshll.u32 %s1516_s29, 4  ;;  %s25_s30 = int_to_ptr.vmem [resolvable:$true] %s24_s30 }
   0x6   :  { %s1480_s9 = scalar_lea.vmem %s25_s30, 256  ;;  %p1485_p1 = scmp.lt.s32.totalorder %s25_s30, %s25_s30 }
   0x7   :  { %p1481_p0 = scmp.ne.s32.totalorder %s25_s30, %s1480_s9  ;;  %p1486_p2 = scmp.lt.s32.totalorder %s1480_s9, %s1480_s9 }
   0x9   :  { %p1487_p3 = por %p1486_p2, %p1485_p1 }
   0xb   :  { %p1488_p4 = pnand %p1487_p3, %p1481_p0 }
   0xd   :  { %1491 = shalt.err (!%p1488_p4)
}
   0xe   :  { %s1517_s10 = smov 128   ;;  %s1518_s11 = smov 8  }
   0xf   :  { %30 = dma.hbm_to_vmem [thread:$0]  %s1815_s1, 256, %s25_s30, [#allocation6], %s1517_s10, %s1517_s10, %s1518_s11  }
  0x10   :  { %1512 = dma.done.wait [#allocation6], 256  }
  0x11   :  { %1513 = vsyncadd [#allocation6], 4294967040  ;;  %vm57_vm0 = vcmask 130048   ;;  %v49_v1 = vld [vmem:[#allocation5 + $0x8] sm:$0xff]  ;;  %v48_v2 = vld [vmem:[#allocation5] sm:$0xff]  ;;  %s1519_s18 = smov 64  }
  0x12   :  { %v46_v3 = vld [vmem:[%s1814_s0] sm:$0xff]  ;;  %1283 = vmatprep.subr.mxu0 %v49_v1  ;;  %v47_v4 = vld [vmem:[%s1814_s0 + $0x8] sm:$0xff]  ;;  %v1590_v18 = vld [vmem:[%s1816_s2 + $0x18] sm:$0xff]  ;;  %v1520_v19 = vmov 0.0   ;;  %vm1521_vm1 = vmmov 0   ;;  %s1523_s25 = smov 32  }
  0x13   :  { %1287 = vmatprep.mubr.msk.f32.mxu0 %vm57_vm0, %v46_v3  ;;  %1284 = vmatpush3.msra.mxu0 %v49_v1  ;;  %v1217_v5 = vld [vmem:[%s1817_s3] ss:$0 sm:$0xff]  ;;  %v1596_v20 = vld [vmem:[%s1816_s2 + $0x10] sm:$0xff]  ;;  %v1606_v21 = vld [vmem:[%s1816_s2 + $0x8] sm:$0xff]  ;;  %vm164_vm2 = vcmask 254976   ;;  %vm171_vm3 = vcmask 261120  }
  0x14   :  { %1285 = vmatprep.subr.mxu0 %v48_v2  ;;  %1290 = vmatprep.subr.mxu1 %v1520_v19  ;;  %v1615_v22 = vld [vmem:[%s1816_s2] sm:$0xff]  ;;  %s1522_s2 = smov 96   ;;  %vm989_vm4 = vcmask 1024   ;;  %s1525_s5 = smov [#allocation8]   ;;  %vm1200_vm5 = vcmask 74752  }
  0x15   :  { %1286 = vmatpush3.msra.mxu0 %v48_v2  ;;  %1298 = vmatprep.mubr.msk.f32.mxu1 %vm1521_vm1, %v1520_v19  ;;  %s1208_s14 = sshll.u32 %s1525_s5, 4  ;;  %s1209_s14 = int_to_ptr.vmem [resolvable:$true] %s1208_s14 }
  0x16   :  { %1288 = vmatmul.mubr.msk.f32.vlgmr.msra.gmra.mxu0 %vm57_vm0, %v47_v4  ;;  %1291 = vmatpush3.msra.mxu1 %v1590_v18  ;;  %s1492_s15 = scalar_lea.vmem %s1209_s14, 32  ;;  %p1497_p6 = scmp.lt.s32.totalorder %s1209_s14, %s1209_s14 }
  0x17   :  { %1301 = vmatprep.subr.mxu0 %v1520_v19  ;;  %1292 = vmatprep.subr.mxu1 %v1520_v19  ;;  %p1493_p5 = scmp.ne.s32.totalorder %s1209_s14, %s1492_s15  ;;  %p1498_p7 = scmp.lt.s32.totalorder %s1492_s15, %s1492_s15 }
  0x18   :  { %1302 = vmatpush3.msra.mxu0 %v1590_v18  ;;  %1293 = vmatpush3.msra.mxu1 %v1596_v20 }
  0x19   :  { %1303 = vmatprep.subr.mxu0 %v1520_v19  ;;  %1294 = vmatprep.subr.mxu1 %v1520_v19  ;;  %p1499_p8 = por %p1498_p7, %p1497_p6 }
  0x1a   :  { %1304 = vmatpush3.msra.mxu0 %v1596_v20  ;;  %1295 = vmatpush3.msra.mxu1 %v1606_v21 }
  0x1b   :  { %1305 = vmatprep.subr.mxu0 %v1520_v19  ;;  %1296 = vmatprep.subr.mxu1 %v1520_v19  ;;  %p1500_p9 = pnand %p1499_p8, %p1493_p5 }
  0x1c   :  { %1306 = vmatpush3.msra.mxu0 %v1606_v21  ;;  %1297 = vmatpush3.msra.mxu1 %v1615_v22 }
  0x1d   :  { %1307 = vmatprep.subr.mxu0 %v1520_v19  ;;  %1309 = vmatprep.mubr.msk.f32.mxu0 %vm1521_vm1, %v1520_v19 }
  0x1e   :  { %1308 = vmatpush3.msra.mxu0 %v1615_v22  ;;  %1312 = vmatprep.subr.mxu1 %v1520_v19 }
  0x1f   :  { %1323 = vmatprep.subr.mxu0 %v1520_v19 }
  0xd6   :  { %v1289_v6 = vpop.f32.mrf.mxu0 }
  0xd7   :  { %v136_v7 = vadd.f32 %v1289_v6, %v1217_v5 }
  0xd8   :  { %v130_v8 = vpop.f32.mrf.mxu0 }
  0xd9   :  { %140 = vst [vmem:[#allocation2 + $0x8] sm:$0xff] %v136_v7  ;;  %v131_v9 = vadd.f32 %v1217_v5, %v130_v8 }
  0xdb   :  { %139 = vst [vmem:[#allocation2] sm:$0xff] %v131_v9 }
  0xe2   :  { %v141_v10 = vld [vmem:[#allocation2] sm:$0x3]  ;;  %v166_v27 = vld [vmem:[#allocation2 + $0x2] sm:$0x3]  ;;  %v279_v46 = vld [vmem:[#allocation2 + $0x4] sm:$0x3] }
  0xe3   :  { %1390 = vtanh.f32 %v141_v10  ;;  %v1220_v12 = vmul.f32 -1.442695, %v141_v10  ;;  %v387_v0 = vld [vmem:[#allocation2 + $0x6] sm:$0x3] }
  0xe5   :  { %1392 = vpow2.f32 %v1220_v12 }
  0xf0   :  { %v1391_v11 = vpop.eup %1390 }
  0xf1   :  { %150 = vrot.lane.b32.xlu0 %v1391_v11, %s1519_s18 }
  0xf2   :  { %v1393_v13 = vpop.eup %1392 }
  0xf3   :  { %v145_v14 = vadd.f32 1.0, %v1393_v13 }
  0xf5   :  { %1394 = vrcp.f32 %v145_v14 }
 0x102   :  { %v1395_v15 = vpop.eup %1394 }
 0x163   :  { %v151_v16 = vpop.permute.xlu0 %150 }
 0x164   :  { %v153_v17 = vmul.f32 %v1395_v15, %v151_v16 }
 0x166   :  { %1396 = vtanh.f32 %v153_v17 }
 0x173   :  { %v1397_v23 = vpop.eup %1396 }
 0x174   :  { %156 = vrot.lane.b32.xlu0 %v1397_v23, %s1522_s2  ;;  %v495_v23 = vld [vmem:[#allocation2 + $0x8] sm:$0x3] }
 0x178   :  { %253 = vrot.lane.b32.xlu0 %v153_v17, %s1523_s25 }
 0x1e6   :  { %v157_v24 = vpop.permute.xlu0 %156 }
 0x1e7   :  { %v159_v25 = vmul.f32 %v1395_v15, %v157_v24 }
 0x1e9   :  { %161 = vrot.lane.b32.xlu1 %v159_v25, %s1523_s25 }
 0x1ea   :  { %v254_v38 = vpop.permute.xlu0 %253 }
 0x25b   :  { %v162_v26 = vpop.permute.xlu1 %161 }
 0x25c   :  { %165 = vst.msk [vmem:[#allocation3] sm:$0x3] %vm164_vm2, %v162_v26  ;;  %1299 = vmatmul.mubr.msk.f32.vlgmr.msra.gmra.mxu1 %vm171_vm3, %v162_v26 }
 0x25d   :  { %1313 = vmatpush3.msra.mxu1 %v1590_v18  ;;  %1320 = vmatprep.mubr.msk.f32.mxu1 %vm1521_vm1, %v1520_v19 }
 0x25e   :  { %1314 = vmatprep.subr.mxu1 %v1520_v19 }
 0x25f   :  { %1315 = vmatpush3.msra.mxu1 %v1596_v20 }
 0x260   :  { %1316 = vmatprep.subr.mxu1 %v1520_v19 }
 0x261   :  { %1317 = vmatpush3.msra.mxu1 %v1606_v21 }
 0x262   :  { %1318 = vmatprep.subr.mxu1 %v1520_v19 }
 0x263   :  { %1319 = vmatpush3.msra.mxu1 %v1615_v22 }
 0x264   :  { %1334 = vmatprep.subr.mxu1 %v1520_v19 }
 0x31c   :  { %v240_v28 = vpop.f32.mrf.mxu1 }
 0x31d   :  { %v244_v29 = vadd.f32 %v240_v28, %v166_v27 }
 0x31e   :  { %v1300_v30 = vpop.f32.mrf.mxu1 }
 0x31f   :  { %1398 = vtanh.f32 %v244_v29  ;;  %v1222_v32 = vmul.f32 -1.442695, %v244_v29 }
 0x321   :  { %1400 = vpow2.f32 %v1222_v32 }
 0x32c   :  { %v1399_v31 = vpop.eup %1398 }
 0x32d   :  { %258 = vrot.lane.b32.xlu1 %v1399_v31, %s1519_s18 }
 0x32e   :  { %v1401_v33 = vpop.eup %1400 }
 0x32f   :  { %v248_v34 = vadd.f32 1.0, %v1401_v33 }
 0x331   :  { %1402 = vrcp.f32 %v248_v34 }
 0x33e   :  { %v1403_v35 = vpop.eup %1402 }
 0x33f   :  { %v256_v39 = vmul.f32 %v1403_v35, %v254_v38 }
 0x39f   :  { %v259_v36 = vpop.permute.xlu1 %258 }
 0x3a0   :  { %v261_v37 = vmul.f32 %v1403_v35, %v259_v36 }
 0x3a2   :  { %263 = vrot.lane.b32.xlu1 %v261_v37, %s1523_s25 }
 0x414   :  { %v264_v40 = vpop.permute.xlu1 %263 }
 0x415   :  { %v266_v41 = vadd.f32 %v264_v40, %v256_v39 }
 0x417   :  { %1404 = vtanh.f32 %v266_v41 }
 0x424   :  { %v1405_v42 = vpop.eup %1404 }
 0x425   :  { %269 = vrot.lane.b32.xlu0 %v1405_v42, %s1519_s18 }
 0x497   :  { %v270_v43 = vpop.permute.xlu0 %269 }
 0x498   :  { %v272_v44 = vmul.f32 %v1403_v35, %v270_v43 }
 0x49a   :  { %274 = vrot.lane.b32.xlu1 %v272_v44, %s1523_s25 }
 0x50c   :  { %v275_v45 = vpop.permute.xlu1 %274 }
 0x50d   :  { %278 = vst.msk [vmem:[#allocation3 + $0x2] sm:$0x3] %vm164_vm2, %v275_v45  ;;  %1310 = vmatmul.mubr.msk.f32.vlgmr.msra.gmra.mxu0 %vm171_vm3, %v275_v45 }
 0x50e   :  { %1324 = vmatpush3.msra.mxu0 %v1590_v18  ;;  %1331 = vmatprep.mubr.msk.f32.mxu0 %vm1521_vm1, %v1520_v19 }
 0x50f   :  { %1325 = vmatprep.subr.mxu0 %v1520_v19 }
 0x510   :  { %1326 = vmatpush3.msra.mxu0 %v1596_v20 }
 0x511   :  { %1327 = vmatprep.subr.mxu0 %v1520_v19 }
 0x512   :  { %1328 = vmatpush3.msra.mxu0 %v1606_v21 }
 0x513   :  { %1329 = vmatprep.subr.mxu0 %v1520_v19 }
 0x514   :  { %1330 = vmatpush3.msra.mxu0 %v1615_v22 }
 0x515   :  { %1345 = vmatprep.subr.mxu0 %v1520_v19 }
 0x5cd   :  { %v352_v47 = vpop.f32.mrf.mxu0 }
 0x5ce   :  { %v356_v48 = vadd.f32 %v352_v47, %v279_v46 }
 0x5cf   :  { %v1311_v49 = vpop.f32.mrf.mxu0 }
 0x5d0   :  { %1406 = vtanh.f32 %v356_v48  ;;  %v1224_v51 = vmul.f32 -1.442695, %v356_v48 }
 0x5d2   :  { %1408 = vpow2.f32 %v1224_v51 }
 0x5dd   :  { %v1407_v50 = vpop.eup %1406 }
 0x5de   :  { %366 = vrot.lane.b32.xlu0 %v1407_v50, %s1519_s18 }
 0x5df   :  { %v1409_v52 = vpop.eup %1408 }
 0x5e0   :  { %v360_v53 = vadd.f32 1.0, %v1409_v52 }
 0x5e2   :  { %1410 = vrcp.f32 %v360_v53 }
 0x5ef   :  { %v1411_v54 = vpop.eup %1410 }
 0x5f0   :  { %v364_v57 = vmul.f32 %v1411_v54, %v266_v41  ;;  %v603_v41 = vld [vmem:[#allocation2 + $0xa] sm:$0x3] }
 0x650   :  { %v367_v55 = vpop.permute.xlu0 %366 }
 0x651   :  { %v369_v56 = vmul.f32 %v1411_v54, %v367_v55  ;;  %v711_v55 = vld [vmem:[#allocation2 + $0xc] sm:$0x3] }
 0x653   :  { %371 = vrot.lane.b32.xlu1 %v369_v56, %s1523_s25 }
 0x6c5   :  { %v372_v58 = vpop.permute.xlu1 %371 }
 0x6c6   :  { %v374_v59 = vadd.f32 %v372_v58, %v364_v57 }
 0x6c8   :  { %1412 = vtanh.f32 %v374_v59 }
 0x6d5   :  { %v1413_v60 = vpop.eup %1412 }
 0x6d6   :  { %377 = vrot.lane.b32.xlu0 %v1413_v60, %s1519_s18 }
 0x748   :  { %v378_v61 = vpop.permute.xlu0 %377 }
 0x749   :  { %v380_v62 = vmul.f32 %v1411_v54, %v378_v61 }
 0x74b   :  { %382 = vrot.lane.b32.xlu1 %v380_v62, %s1523_s25 }
 0x7bd   :  { %v383_v63 = vpop.permute.xlu1 %382 }
 0x7be   :  { %386 = vst.msk [vmem:[#allocation3 + $0x4] sm:$0x3] %vm164_vm2, %v383_v63  ;;  %1321 = vmatmul.mubr.msk.f32.vlgmr.msra.gmra.mxu1 %vm171_vm3, %v383_v63 }
 0x7bf   :  { %1335 = vmatpush3.msra.mxu1 %v1590_v18  ;;  %1342 = vmatprep.mubr.msk.f32.mxu1 %vm1521_vm1, %v1520_v19 }
 0x7c0   :  { %1336 = vmatprep.subr.mxu1 %v1520_v19 }
 0x7c1   :  { %1337 = vmatpush3.msra.mxu1 %v1596_v20 }
 0x7c2   :  { %1338 = vmatprep.subr.mxu1 %v1520_v19 }
 0x7c3   :  { %1339 = vmatpush3.msra.mxu1 %v1606_v21 }
 0x7c4   :  { %1340 = vmatprep.subr.mxu1 %v1520_v19 }
 0x7c5   :  { %1341 = vmatpush3.msra.mxu1 %v1615_v22 }
 0x7c6   :  { %1356 = vmatprep.subr.mxu1 %v1520_v19 }
 0x87e   :  { %v460_v1 = vpop.f32.mrf.mxu1 }
 0x87f   :  { %v464_v2 = vadd.f32 %v460_v1, %v387_v0 }
 0x880   :  { %v1322_v3 = vpop.f32.mrf.mxu1 }
 0x881   :  { %1414 = vtanh.f32 %v464_v2  ;;  %v1226_v5 = vmul.f32 -1.442695, %v464_v2 }
 0x883   :  { %1416 = vpow2.f32 %v1226_v5 }
 0x88e   :  { %v1415_v4 = vpop.eup %1414 }
 0x88f   :  { %474 = vrot.lane.b32.xlu0 %v1415_v4, %s1519_s18 }
 0x890   :  { %v1417_v6 = vpop.eup %1416 }
 0x891   :  { %v468_v7 = vadd.f32 1.0, %v1417_v6 }
 0x893   :  { %1418 = vrcp.f32 %v468_v7 }
 0x8a0   :  { %v1419_v8 = vpop.eup %1418 }
 0x8a1   :  { %v472_v11 = vmul.f32 %v1419_v8, %v374_v59 }
 0x901   :  { %v475_v9 = vpop.permute.xlu0 %474 }
 0x902   :  { %v477_v10 = vmul.f32 %v1419_v8, %v475_v9  ;;  %v819_v9 = vld [vmem:[#allocation2 + $0xe] sm:$0x3] }
 0x904   :  { %479 = vrot.lane.b32.xlu1 %v477_v10, %s1523_s25 }
 0x976   :  { %v480_v12 = vpop.permute.xlu1 %479 }
 0x977   :  { %v482_v13 = vadd.f32 %v480_v12, %v472_v11 }
 0x979   :  { %1420 = vtanh.f32 %v482_v13 }
 0x986   :  { %v1421_v14 = vpop.eup %1420 }
 0x987   :  { %485 = vrot.lane.b32.xlu0 %v1421_v14, %s1519_s18 }
 0x9f9   :  { %v486_v15 = vpop.permute.xlu0 %485 }
 0x9fa   :  { %v488_v16 = vmul.f32 %v1419_v8, %v486_v15 }
 0x9fc   :  { %490 = vrot.lane.b32.xlu1 %v488_v16, %s1523_s25 }
 0xa6e   :  { %v491_v17 = vpop.permute.xlu1 %490 }
 0xa6f   :  { %494 = vst.msk [vmem:[#allocation3 + $0x6] sm:$0x3] %vm164_vm2, %v491_v17  ;;  %1332 = vmatmul.mubr.msk.f32.vlgmr.msra.gmra.mxu0 %vm171_vm3, %v491_v17 }
 0xa70   :  { %1346 = vmatpush3.msra.mxu0 %v1590_v18  ;;  %1353 = vmatprep.mubr.msk.f32.mxu0 %vm1521_vm1, %v1520_v19 }
 0xa71   :  { %1347 = vmatprep.subr.mxu0 %v1520_v19 }
 0xa72   :  { %1348 = vmatpush3.msra.mxu0 %v1596_v20 }
 0xa73   :  { %1349 = vmatprep.subr.mxu0 %v1520_v19 }
 0xa74   :  { %1350 = vmatpush3.msra.mxu0 %v1606_v21 }
 0xa75   :  { %1351 = vmatprep.subr.mxu0 %v1520_v19 }
 0xa76   :  { %1352 = vmatpush3.msra.mxu0 %v1615_v22 }
 0xa77   :  { %1367 = vmatprep.subr.mxu0 %v1520_v19 }
 0xb2f   :  { %v568_v24 = vpop.f32.mrf.mxu0 }
 0xb30   :  { %v572_v25 = vadd.f32 %v568_v24, %v495_v23 }
 0xb31   :  { %v1333_v26 = vpop.f32.mrf.mxu0 }
 0xb32   :  { %1422 = vtanh.f32 %v572_v25  ;;  %v1228_v28 = vmul.f32 -1.442695, %v572_v25 }
 0xb34   :  { %1424 = vpow2.f32 %v1228_v28 }
 0xb3f   :  { %v1423_v27 = vpop.eup %1422 }
 0xb40   :  { %582 = vrot.lane.b32.xlu0 %v1423_v27, %s1519_s18 }
 0xb41   :  { %v1425_v29 = vpop.eup %1424 }
 0xb42   :  { %v576_v30 = vadd.f32 1.0, %v1425_v29  ;;  %v1723_v29 = vld [vmem:[#allocation3] sm:$0x3] }
 0xb44   :  { %1426 = vrcp.f32 %v576_v30  ;;  %v1235_v30 = vld [vmem:[%s1818_s4] ss:$0 sm:$0xff] }
 0xb51   :  { %v1427_v31 = vpop.eup %1426 }
 0xb52   :  { %v580_v34 = vmul.f32 %v1427_v31, %v482_v13 }
 0xbb2   :  { %v583_v32 = vpop.permute.xlu0 %582 }
 0xbb3   :  { %v585_v33 = vmul.f32 %v1427_v31, %v583_v32  ;;  %v1729_v32 = vld [vmem:[#allocation3 + $0x4] sm:$0x3] }
 0xbb5   :  { %587 = vrot.lane.b32.xlu1 %v585_v33, %s1523_s25 }
 0xc27   :  { %v588_v35 = vpop.permute.xlu1 %587 }
 0xc28   :  { %v590_v36 = vadd.f32 %v588_v35, %v580_v34  ;;  %v944_v34 = vmul.f32 %v1235_v30, %v1729_v32  ;;  %v1733_v35 = vld [vmem:[#allocation3 + $0x6] sm:$0x3] }
 0xc2a   :  { %1428 = vtanh.f32 %v590_v36 }
 0xc37   :  { %v1429_v37 = vpop.eup %1428 }
 0xc38   :  { %593 = vrot.lane.b32.xlu0 %v1429_v37, %s1519_s18  ;;  %v945_v37 = vmul.f32 %v1235_v30, %v1733_v35 }
 0xcaa   :  { %v594_v38 = vpop.permute.xlu0 %593 }
 0xcab   :  { %v596_v39 = vmul.f32 %v1427_v31, %v594_v38  ;;  %v942_v31 = vmul.f32 %v1235_v30, %v1723_v29 }
 0xcad   :  { %598 = vrot.lane.b32.xlu1 %v596_v39, %s1523_s25  ;;  %v950_v33 = vsel %vm164_vm2, %v942_v31, 0.0  ;;  %v959_v39 = vsel %vm164_vm2, %v945_v37, 0.0 }
 0xd1f   :  { %v599_v40 = vpop.permute.xlu1 %598 }
 0xd20   :  { %602 = vst.msk [vmem:[#allocation3 + $0x8] sm:$0x3] %vm164_vm2, %v599_v40  ;;  %1343 = vmatmul.mubr.msk.f32.vlgmr.msra.gmra.mxu1 %vm171_vm3, %v599_v40 }
 0xd21   :  { %1357 = vmatpush3.msra.mxu1 %v1590_v18  ;;  %1364 = vmatprep.mubr.msk.f32.mxu1 %vm1521_vm1, %v1520_v19 }
 0xd22   :  { %1358 = vmatprep.subr.mxu1 %v1520_v19 }
 0xd23   :  { %1359 = vmatpush3.msra.mxu1 %v1596_v20 }
 0xd24   :  { %1360 = vmatprep.subr.mxu1 %v1520_v19 }
 0xd25   :  { %1361 = vmatpush3.msra.mxu1 %v1606_v21 }
 0xd26   :  { %1362 = vmatprep.subr.mxu1 %v1520_v19 }
 0xd27   :  { %1363 = vmatpush3.msra.mxu1 %v1615_v22 }
 0xde0   :  { %v676_v42 = vpop.f32.mrf.mxu1 }
 0xde1   :  { %v680_v43 = vadd.f32 %v676_v42, %v603_v41 }
 0xde2   :  { %v1344_v44 = vpop.f32.mrf.mxu1 }
 0xde3   :  { %1430 = vtanh.f32 %v680_v43  ;;  %v1230_v45 = vmul.f32 -1.442695, %v680_v43  ;;  %v1743_v44 = vld [vmem:[#allocation3 + $0x2] sm:$0x3] }
 0xde5   :  { %1432 = vpow2.f32 %v1230_v45  ;;  %v1746_v45 = vld [vmem:[#allocation3 + $0x8] sm:$0x3] }
 0xdf0   :  { %v1431_v18 = vpop.eup %1430 }
 0xdf1   :  { %690 = vrot.lane.b32.xlu0 %v1431_v18, %s1519_s18  ;;  %v943_v18 = vmul.f32 %v1235_v30, %v1743_v44 }
 0xdf2   :  { %v1433_v46 = vpop.eup %1432 }
 0xdf3   :  { %v684_v20 = vadd.f32 1.0, %v1433_v46  ;;  %v953_v46 = vsel %vm164_vm2, %v943_v18, 0.0 }
 0xdf5   :  { %1434 = vrcp.f32 %v684_v20  ;;  %v946_v20 = vmul.f32 %v1235_v30, %v1746_v45 }
 0xe02   :  { %v1435_v47 = vpop.eup %1434 }
 0xe03   :  { %v688_v49 = vmul.f32 %v1435_v47, %v590_v36  ;;  %v956_v36 = vsel %vm164_vm2, %v944_v34, 0.0 }
 0xe63   :  { %v691_v48 = vpop.permute.xlu0 %690 }
 0xe64   :  { %v693_v21 = vmul.f32 %v1435_v47, %v691_v48  ;;  %v962_v48 = vsel %vm164_vm2, %v946_v20, 0.0 }
 0xe66   :  { %695 = vrot.lane.b32.xlu1 %v693_v21, %s1523_s25 }
 0xed8   :  { %v696_v22 = vpop.permute.xlu1 %695 }
 0xed9   :  { %v698_v50 = vadd.f32 %v696_v22, %v688_v49 }
 0xedb   :  { %1436 = vtanh.f32 %v698_v50 }
 0xee8   :  { %v1437_v51 = vpop.eup %1436 }
 0xee9   :  { %701 = vrot.lane.b32.xlu0 %v1437_v51, %s1519_s18 }
 0xf5b   :  { %v702_v52 = vpop.permute.xlu0 %701 }
 0xf5c   :  { %v704_v53 = vmul.f32 %v1435_v47, %v702_v52 }
 0xf5e   :  { %706 = vrot.lane.b32.xlu1 %v704_v53, %s1523_s25  ;;  %v1524_v53 = vmov 0  }
 0xf5f   :  { %1389 = vset.pattern.permute.xlu0 %v1524_v53  ;;  %1388 = vset.pattern.permute.xlu1 %v1524_v53 }
 0xfd0   :  { %v707_v54 = vpop.permute.xlu1 %706 }
 0xfd1   :  { %710 = vst.msk [vmem:[#allocation3 + $0xa] sm:$0x3] %vm164_vm2, %v707_v54  ;;  %1354 = vmatmul.mubr.msk.f32.vlgmr.msra.gmra.mxu0 %vm171_vm3, %v707_v54 }
 0xfd2   :  { %1375 = vmatprep.mubr.msk.f32.mxu0 %vm1521_vm1, %v1520_v19 }
 0xfd8   :  { %v1737_v38 = vld [vmem:[#allocation3 + $0xa] sm:$0x3] }
 0xfd9   :  { %v947_v40 = vmul.f32 %v1235_v30, %v1737_v38 }
 0xfdb   :  { %v965_v41 = vsel %vm164_vm2, %v947_v40, 0.0 }
0x1091   :  { %v784_v56 = vpop.f32.mrf.mxu0 }
0x1092   :  { %v788_v57 = vadd.f32 %v784_v56, %v711_v55 }
0x1093   :  { %v1355_v58 = vpop.f32.mrf.mxu0 }
0x1094   :  { %1438 = vtanh.f32 %v788_v57  ;;  %v1232_v60 = vmul.f32 -1.442695, %v788_v57 }
0x1096   :  { %1440 = vpow2.f32 %v1232_v60 }
0x10a1   :  { %v1439_v59 = vpop.eup %1438 }
0x10a2   :  { %798 = vrot.lane.b32.xlu0 %v1439_v59, %s1519_s18  ;;  %v1236_v59 = vld [vmem:[#allocation4] ss:$0 sm:$0xff] }
0x10a3   :  { %v1441_v61 = vpop.eup %1440 }
0x10a4   :  { %v792_v62 = vadd.f32 1.0, %v1441_v61 }
0x10a6   :  { %1442 = vrcp.f32 %v792_v62 }
0x10b3   :  { %v1443_v63 = vpop.eup %1442 }
0x10b4   :  { %v796_v2 = vmul.f32 %v1443_v63, %v698_v50 }
0x1114   :  { %v799_v0 = vpop.permute.xlu0 %798 }
0x1115   :  { %v801_v1 = vmul.f32 %v1443_v63, %v799_v0 }
0x1117   :  { %803 = vrot.lane.b32.xlu1 %v801_v1, %s1523_s25 }
0x1189   :  { %v804_v3 = vpop.permute.xlu1 %803 }
0x118a   :  { %v806_v4 = vadd.f32 %v804_v3, %v796_v2 }
0x118c   :  { %1444 = vtanh.f32 %v806_v4 }
0x1199   :  { %v1445_v5 = vpop.eup %1444 }
0x119a   :  { %809 = vrot.lane.b32.xlu0 %v1445_v5, %s1519_s18 }
0x120c   :  { %v810_v6 = vpop.permute.xlu0 %809 }
0x120d   :  { %v812_v7 = vmul.f32 %v1443_v63, %v810_v6 }
0x120f   :  { %814 = vrot.lane.b32.xlu1 %v812_v7, %s1523_s25 }
0x1281   :  { %v815_v8 = vpop.permute.xlu1 %814 }
0x1282   :  { %818 = vst.msk [vmem:[#allocation3 + $0xc] sm:$0x3] %vm164_vm2, %v815_v8  ;;  %1365 = vmatmul.mubr.msk.f32.vlgmr.msra.gmra.mxu1 %vm171_vm3, %v815_v8 }
0x1289   :  { %v1750_v47 = vld [vmem:[#allocation3 + $0xc] sm:$0x3] }
0x128a   :  { %v948_v21 = vmul.f32 %v1235_v30, %v1750_v47 }
0x128c   :  { %v968_v49 = vsel %vm164_vm2, %v948_v21, 0.0 }
0x1342   :  { %v892_v10 = vpop.f32.mrf.mxu1 }
0x1343   :  { %v896_v11 = vadd.f32 %v892_v10, %v819_v9 }
0x1344   :  { %v1366_v12 = vpop.f32.mrf.mxu1 }
0x1345   :  { %1446 = vtanh.f32 %v896_v11  ;;  %v1234_v14 = vmul.f32 -1.442695, %v896_v11 }
0x1347   :  { %1448 = vpow2.f32 %v1234_v14 }
0x1352   :  { %v1447_v13 = vpop.eup %1446 }
0x1353   :  { %906 = vrot.lane.b32.xlu0 %v1447_v13, %s1519_s18 }
0x1354   :  { %v1449_v15 = vpop.eup %1448 }
0x1355   :  { %v900_v16 = vadd.f32 1.0, %v1449_v15 }
0x1357   :  { %1450 = vrcp.f32 %v900_v16 }
0x1364   :  { %v1451_v17 = vpop.eup %1450 }
0x1365   :  { %v904_v25 = vmul.f32 %v1451_v17, %v806_v4 }
0x13c5   :  { %v907_v23 = vpop.permute.xlu0 %906 }
0x13c6   :  { %v909_v24 = vmul.f32 %v1451_v17, %v907_v23 }
0x13c8   :  { %911 = vrot.lane.b32.xlu1 %v909_v24, %s1523_s25 }
0x143a   :  { %v912_v26 = vpop.permute.xlu1 %911 }
0x143b   :  { %v914_v27 = vadd.f32 %v912_v26, %v904_v25 }
0x143d   :  { %1452 = vtanh.f32 %v914_v27 }
0x144a   :  { %v1453_v28 = vpop.eup %1452 }
0x144b   :  { %917 = vrot.lane.b32.xlu0 %v1453_v28, %s1519_s18 }
0x146a   :  { %951 = vadd.xlane.f32.xlu0 %v950_v33 }
0x146e   :  { %957 = vadd.xlane.f32.xlu0 %v956_v36 }
0x1472   :  { %960 = vadd.xlane.f32.xlu0 %v959_v39 }
0x1476   :  { %966 = vadd.xlane.f32.xlu0 %v965_v41 }
0x14bd   :  { %v918_v42 = vpop.permute.xlu0 %917 }
0x14be   :  { %v920_v43 = vmul.f32 %v1451_v17, %v918_v42 }
0x14c0   :  { %922 = vrot.lane.b32.xlu1 %v920_v43, %s1523_s25 }
0x14e4   :  { %954 = vadd.xlane.f32.xlu1 %v953_v46 }
0x14e8   :  { %963 = vadd.xlane.f32.xlu1 %v962_v48 }
0x14ec   :  { %969 = vadd.xlane.f32.xlu1 %v968_v49 }
0x14f3   :  { %v952_v54 = vpop.xlane.xlu0 %951 }
0x14f4   :  { %v981_v63 = vadd.f32 %v1236_v59, %v952_v54 }
0x14f6   :  { %v990_v7 = vsel %vm989_vm4, %v981_v63, -inf }
0x14f7   :  { %v958_v56 = vpop.xlane.xlu0 %957 }
0x14f8   :  { %v983_v2 = vadd.f32 %v1236_v59, %v958_v56 }
0x14fa   :  { %v992_v12 = vsel %vm989_vm4, %v983_v2, -inf }
0x14fb   :  { %v961_v58 = vpop.xlane.xlu0 %960 }
0x14fc   :  { %v984_v3 = vadd.f32 %v1236_v59, %v961_v58 }
0x14fe   :  { %v993_v13 = vsel %vm989_vm4, %v984_v3, -inf }
0x14ff   :  { %v967_v62 = vpop.xlane.xlu0 %966 }
0x1500   :  { %v986_v4 = vadd.f32 %v1236_v59, %v967_v62 }
0x1502   :  { %v996_v14 = vsel %vm989_vm4, %v986_v4, -inf }
0x1532   :  { %v923_v22 = vpop.permute.xlu1 %922 }
0x1533   :  { %926 = vst.msk [vmem:[#allocation3 + $0xe] sm:$0x3] %vm164_vm2, %v923_v22 }
0x153a   :  { %v1756_v50 = vld [vmem:[#allocation3 + $0xe] sm:$0x3] }
0x153b   :  { %v949_v51 = vmul.f32 %v1235_v30, %v1756_v50 }
0x153d   :  { %v971_v52 = vsel %vm164_vm2, %v949_v51, 0.0 }
0x153e   :  { %972 = vadd.xlane.f32.xlu0 %v971_v52 }
0x156d   :  { %v955_v55 = vpop.xlane.xlu1 %954 }
0x156e   :  { %v982_v0 = vadd.f32 %v1236_v59, %v955_v55 }
0x1570   :  { %v991_v8 = vsel %vm989_vm4, %v982_v0, -inf }
0x1571   :  { %v964_v57 = vpop.xlane.xlu1 %963  ;;  %v997_v16 = vmax.f32 %v991_v8, %v996_v14  ;;  %v1119_v14 = vld [vmem:[%s1820_s6 + $0x18] sm:$0xff] }
0x1572   :  { %v985_v61 = vadd.f32 %v1236_v59, %v964_v57  ;;  %1368 = vmatpush3.msra.mxu0 %v1119_v14 }
0x1573   :  { %1369 = vmatprep.subr.mxu0 %v1520_v19 }
0x1574   :  { %v994_v5 = vsel %vm989_vm4, %v985_v61, -inf }
0x1575   :  { %v970_v60 = vpop.xlane.xlu1 %969  ;;  %v995_v11 = vmax.f32 %v990_v7, %v994_v5 }
0x1576   :  { %v987_v1 = vadd.f32 %v1236_v59, %v970_v60 }
0x1577   :  { %v1002_v24 = vmax.f32 %v995_v11, %v997_v16 }
0x1578   :  { %v998_v9 = vsel %vm989_vm4, %v987_v1, -inf }
0x1579   :  { %v999_v17 = vmax.f32 %v992_v12, %v998_v9 }
0x15c7   :  { %v973_v6 = vpop.xlane.xlu0 %972 }
0x15c8   :  { %v988_v10 = vadd.f32 %v1236_v59, %v973_v6 }
0x15ca   :  { %v1000_v15 = vsel %vm989_vm4, %v988_v10, -inf }
0x15cb   :  { %v1001_v23 = vmax.f32 %v993_v13, %v1000_v15  ;;  %v1118_v15 = vld [vmem:[%s1820_s6 + $0x10] sm:$0xff] }
0x15cc   :  { %1370 = vmatpush3.msra.mxu0 %v1118_v15 }
0x15cd   :  { %v1003_v25 = vmax.f32 %v999_v17, %v1001_v23  ;;  %1371 = vmatprep.subr.mxu0 %v1520_v19  ;;  %v1117_v17 = vld [vmem:[%s1820_s6 + $0x8] sm:$0xff]  ;;  %v1116_v23 = vld [vmem:[%s1820_s6] sm:$0xff] }
0x15ce   :  { %1372 = vmatpush3.msra.mxu0 %v1117_v17 }
0x15cf   :  { %v1004_v26 = vmax.f32 %v1002_v24, %v1003_v25  ;;  %1373 = vmatprep.subr.mxu0 %v1520_v19 }
0x15d0   :  { %1374 = vmatpush3.msra.mxu0 %v1116_v23 }
0x15d1   :  { %v1005_v27 = vsub.f32 %v981_v63, %v1004_v26  ;;  %v1007_v28 = vsub.f32 %v983_v2, %v1004_v26  ;;  %v1006_v31 = vsub.f32 %v982_v0, %v1004_v26  ;;  %v1008_v33 = vsub.f32 %v984_v3, %v1004_v26 }
0x15d2   :  { %v1009_v36 = vsub.f32 %v985_v61, %v1004_v26  ;;  %v1010_v39 = vsub.f32 %v986_v4, %v1004_v26  ;;  %v1011_v41 = vsub.f32 %v987_v1, %v1004_v26  ;;  %v1012_v43 = vsub.f32 %v988_v10, %v1004_v26 }
0x15d3   :  { %v1013_v30 = vmul.f32 1.442695, %v1005_v27  ;;  %v1017_v34 = vmul.f32 1.442695, %v1007_v28  ;;  %v1015_v37 = vmul.f32 1.442695, %v1006_v31 }
0x15d4   :  { %v1019_v40 = vmul.f32 1.442695, %v1008_v33  ;;  %v1021_v42 = vmul.f32 1.442695, %v1009_v36  ;;  %v1023_v18 = vmul.f32 1.442695, %v1010_v39 }
0x15d5   :  { %1454 = vpow2.f32 %v1013_v30  ;;  %v1025_v46 = vmul.f32 1.442695, %v1011_v41  ;;  %v1027_v20 = vmul.f32 1.442695, %v1012_v43 }
0x15d6   :  { %1456 = vpow2.f32 %v1017_v34 }
0x15d7   :  { %1458 = vpow2.f32 %v1015_v37 }
0x15d8   :  { %1460 = vpow2.f32 %v1019_v40 }
0x15d9   :  { %1462 = vpow2.f32 %v1021_v42 }
0x15da   :  { %1464 = vpow2.f32 %v1023_v18 }
0x15db   :  { %1466 = vpow2.f32 %v1025_v46 }
0x15dc   :  { %1468 = vpow2.f32 %v1027_v20 }
0x15e2   :  { %v1455_v48 = vpop.eup %1454 }
0x15e3   :  { %v1457_v21 = vpop.eup %1456  ;;  %v1029_v49 = vsel %vm989_vm4, %v1455_v48, 0.0 }
0x15e4   :  { %v1459_v22 = vpop.eup %1458  ;;  %v1032_v54 = vsel %vm989_vm4, %v1457_v21, 0.0 }
0x15e5   :  { %v1030_v51 = vsel %vm989_vm4, %v1459_v22, 0.0  ;;  %v1461_v52 = vpop.eup %1460 }
0x15e6   :  { %v1031_v53 = vadd.f32 %v1030_v51, %v1029_v49  ;;  %v1463_v55 = vpop.eup %1462  ;;  %v1034_v57 = vsel %vm989_vm4, %v1461_v52, 0.0 }
0x15e7   :  { %v1465_v58 = vpop.eup %1464  ;;  %v1036_v60 = vsel %vm989_vm4, %v1463_v55, 0.0 }
0x15e8   :  { %v1033_v56 = vadd.f32 %v1032_v54, %v1031_v53  ;;  %v1467_v61 = vpop.eup %1466  ;;  %v1038_v63 = vsel %vm989_vm4, %v1465_v58, 0.0 }
0x15e9   :  { %v1469_v0 = vpop.eup %1468  ;;  %v1040_v2 = vsel %vm989_vm4, %v1467_v61, 0.0 }
0x15ea   :  { %v1035_v59 = vadd.f32 %v1034_v57, %v1033_v56  ;;  %v1042_v4 = vsel %vm989_vm4, %v1469_v0, 0.0 }
0x15ec   :  { %v1037_v62 = vadd.f32 %v1036_v60, %v1035_v59 }
0x15ee   :  { %v1039_v1 = vadd.f32 %v1038_v63, %v1037_v62 }
0x15f0   :  { %v1041_v3 = vadd.f32 %v1040_v2, %v1039_v1 }
0x15f2   :  { %v1043_v5 = vadd.f32 %v1042_v4, %v1041_v3 }
0x15f4   :  { %1470 = vrcp.f32 %v1043_v5 }
0x1601   :  { %v1471_v6 = vpop.eup %1470 }
0x1602   :  { %v1046_v7 = vmul.f32 %v1471_v6, %v1459_v22  ;;  %v1045_v8 = vmul.f32 %v1471_v6, %v1455_v48  ;;  %v1047_v9 = vmul.f32 %v1471_v6, %v1457_v21  ;;  %v1048_v10 = vmul.f32 %v1471_v6, %v1461_v52  ;;  %v1237_v52 = vld [vmem:[%s1821_s7] ss:$0 sm:$0xff] }
0x1603   :  { %v1049_v11 = vmul.f32 %v1471_v6, %v1463_v55  ;;  %v1050_v12 = vmul.f32 %v1471_v6, %v1465_v58  ;;  %v1051_v13 = vmul.f32 %v1471_v6, %v1467_v61  ;;  %v1052_v16 = vmul.f32 %v1471_v6, %v1469_v0 }
0x1604   :  { %1060 = vperm.xlu0 %1389, %v1046_v7   ;;  %1055 = vperm.xlu1 %1388, %v1045_v8  }
0x1608   :  { %1065 = vperm.xlu1 %1388, %v1047_v9  }
0x160c   :  { %1070 = vperm.xlu1 %1388, %v1048_v10  }
0x1610   :  { %1075 = vperm.xlu1 %1388, %v1049_v11  }
0x1614   :  { %1080 = vperm.xlu1 %1388, %v1050_v12  }
0x1618   :  { %1085 = vperm.xlu1 %1388, %v1051_v13  }
0x161c   :  { %1090 = vperm.xlu1 %1388, %v1052_v16  }
0x167f   :  { %v1056_v24 = vpop.permute.xlu1 %1055  ;;  %v1061_v26 = vpop.permute.xlu0 %1060 }
0x1680   :  { %v1094_v28 = vmul.f32 %v1061_v26, %v1743_v44  ;;  %v1093_v30 = vmul.f32 %v1056_v24, %v1723_v29 }
0x1682   :  { %v1102_v34 = vsel %vm164_vm2, %v1094_v28, 0.0  ;;  %v1101_v36 = vsel %vm164_vm2, %v1093_v30, 0.0 }
0x1683   :  { %v1066_v25 = vpop.permute.xlu1 %1065  ;;  %v1103_v40 = vadd.f32 %v1102_v34, %v1101_v36 }
0x1684   :  { %v1095_v31 = vmul.f32 %v1066_v25, %v1729_v32 }
0x1686   :  { %v1104_v19 = vsel %vm164_vm2, %v1095_v31, 0.0 }
0x1687   :  { %v1071_v27 = vpop.permute.xlu1 %1070  ;;  %v1105_v29 = vadd.f32 %v1104_v19, %v1103_v40 }
0x1688   :  { %v1096_v37 = vmul.f32 %v1071_v27, %v1733_v35 }
0x168a   :  { %v1106_v42 = vsel %vm164_vm2, %v1096_v37, 0.0 }
0x168b   :  { %v1076_v33 = vpop.permute.xlu1 %1075  ;;  %v1107_v43 = vadd.f32 %v1106_v42, %v1105_v29 }
0x168c   :  { %v1097_v39 = vmul.f32 %v1076_v33, %v1746_v45 }
0x168e   :  { %v1108_v32 = vsel %vm164_vm2, %v1097_v39, 0.0 }
0x168f   :  { %v1081_v41 = vpop.permute.xlu1 %1080  ;;  %v1109_v35 = vadd.f32 %v1108_v32, %v1107_v43 }
0x1690   :  { %v1098_v44 = vmul.f32 %v1081_v41, %v1737_v38 }
0x1692   :  { %v1110_v46 = vsel %vm164_vm2, %v1098_v44, 0.0 }
0x1693   :  { %v1086_v18 = vpop.permute.xlu1 %1085  ;;  %v1111_v21 = vadd.f32 %v1110_v46, %v1109_v35 }
0x1694   :  { %v1099_v20 = vmul.f32 %v1086_v18, %v1750_v47 }
0x1696   :  { %v1112_v48 = vsel %vm164_vm2, %v1099_v20, 0.0 }
0x1697   :  { %v1091_v45 = vpop.permute.xlu1 %1090  ;;  %v1113_v22 = vadd.f32 %v1112_v48, %v1111_v21 }
0x1698   :  { %v1100_v49 = vmul.f32 %v1091_v45, %v1756_v50 }
0x169a   :  { %v1114_v51 = vsel %vm164_vm2, %v1100_v49, 0.0 }
0x169b   :  { %v1115_v38 = vadd.f32 %v1114_v51, %v1113_v22 }
0x169d   :  { %1376 = vmatmul.mubr.msk.f32.vlgmr.msra.gmra.mxu0 %vm171_vm3, %v1115_v38 }
0x175d   :  { %v1196_v47 = vpop.f32.mrf.mxu0 }
0x175e   :  { %v1197_v53 = vadd.f32 %v1237_v52, %v1196_v47 }
0x175f   :  { %v1377_v54 = vpop.f32.mrf.mxu0 }
0x1760   :  { %1201 = vst.msk [vmem:[#allocation8] sm:$0x3] %vm1200_vm5, %v1197_v53 }
0x1761   :  { %1503 = shalt.err (!%p1500_p9)
}
0x1762   :  { %1211 = dma.vmem_to_hbm [thread:$0]  %s1209_s14, 32, %s1822_s8, [#allocation7]  }
0x1763   :  { %1514 = dma.done.wait [#allocation7], 32  }
0x1764   :  { %1515 = vsyncadd [#allocation7], 4294967264 }
0x1765   :  { %1215 = vsyncpa [#allocation6], 1 }
0x1766   :  { %1216 = vsyncpa [#allocation7], 1 }

</bundles_post_ra>
